<compile_context>
chip_gen: v7x
topology: tpu7x:2x2x1
jax: 0.10.0
libtpu: 0.0.40
codegen_flags: <defaults>
</compile_context>

<pallas_src>
import functools
import math

import jax
import jax.numpy as jnp
from jax import lax
from jax.experimental import pallas as pl
from jax.experimental.pallas import tpu as pltpu


# ----------------------------- shared math helpers ------------------------------

def _layernorm(x, gamma, beta, eps=1e-12):
    mu = jnp.mean(x, axis=-1, keepdims=True)
    var = jnp.mean((x - mu) ** 2, axis=-1, keepdims=True)
    return (x - mu) * lax.rsqrt(var + eps) * gamma + beta


def _gelu(x):
    # exact (erf-based) GELU, matching HF BERT's default "gelu"
    return 0.5 * x * (1.0 + lax.erf(x * 0.7071067811865476))


# --------------------------- spec / compiler-param helpers ------------------------

_MIN_VMEM = 32 * 1024 * 1024
_MAX_VMEM = 60 * 1024 * 1024          # headroom under v7x's 64 MiB per-TC VMEM


def _vmem_limit_bytes(weight_bytes, activation_bytes):
    # single-buffered weights + double-buffered activation tiles + slack
    want = int(weight_bytes + 2 * activation_bytes + (8 << 20))
    return max(_MIN_VMEM, min(want, _MAX_VMEM))


def _weight_spec(shape, index_map):
    """Grid-invariant weight spec; single-buffered when pipeline_mode is available."""
    if hasattr(pl, "Buffered"):
        try:
            return pl.BlockSpec(shape, index_map, pipeline_mode=pl.Buffered(1))
        except TypeError:
            pass
    return pl.BlockSpec(shape, index_map)


# ------------------------------ Pallas kernels -----------------------------------

def split_ffn_tail_kernel(qp_ref, ffn_ref, res_ref, w_ref, b_ref, g_ref, beta_ref,
                          out_ref):
    """Dequant(int8) -> GELU -> dense -> +residual -> LayerNorm for one (b, s-tile)."""
    ffn_scale = qp_ref[0]
    ffn_zp = qp_ref[1]
    res_scale = qp_ref[2]
    res_zp = qp_ref[3]

    # fused per-tensor-affine dequant: int8 -> f32 directly (no int32 pass)
    ffn = (ffn_ref[0].astype(jnp.float32) - ffn_zp) * ffn_scale
    res = (res_ref[0].astype(jnp.float32) - res_zp) * res_scale

    act = _gelu(ffn)                                             # f32
    y = jnp.dot(act.astype(jnp.bfloat16), w_ref[...],
                preferred_element_type=jnp.float32) + b_ref[...]
    # TODO(synk): split_output.dropout is identity at inference time.
    out_ref[0] = _layernorm(y + res, g_ref[...], beta_ref[...]).astype(out_ref.dtype)


def bert_layer_kernel(xq_ref, xf_ref, mask_ref,
                      wq_ref, bq_ref, wk_ref, bk_ref, wv_ref, bv_ref,
                      wo_ref, bo_ref, g1_ref, be1_ref,
                      wi_ref, bi_ref, w2_ref, b2_ref, g2_ref, be2_ref,
                      out_ref, *, num_heads):
    """One fused BertLayer for one (batch, q-tile) grid point.

    Projections / FFN are full-width [*,H]x[H,*] matmuls (MXU-efficient); heads exist
    only for the inherently small score / context contractions.
    """
    xq = xq_ref[0]                                  # [tq, H] f32  (queries + residual)
    xf = xf_ref[0]                                  # [S,  H] f32  (keys / values)
    mask = mask_ref[0]                              # [1,  S] additive mask (0 / -1e4)
    tq, H = xq.shape
    S = xf.shape[0]
    nh = num_heads
    dh = H // nh
    scale = 1.0 / math.sqrt(dh)
    bf = jnp.bfloat16
    f32 = jnp.float32

    xq_bf = xq.astype(bf)
    xf_bf = xf.astype(bf)

    # ---- full-width Q / K / V projections (K = N = H on the MXU) ----
    q = (jnp.dot(xq_bf, wq_ref[...], preferred_element_type=f32) + bq_ref[...]) * scale
    k = jnp.dot(xf_bf, wk_ref[...], preferred_element_type=f32) + bk_ref[...]
    v = jnp.dot(xf_bf, wv_ref[...], preferred_element_type=f32) + bv_ref[...]

    # cheap head split (lane reshape); 1/sqrt(dh) already folded into q above
    q3 = q.astype(bf).reshape(tq, nh, dh)           # [tq, nh, dh]
    k3 = k.astype(bf).reshape(S, nh, dh)            # [S,  nh, dh]
    v3 = v.astype(bf).reshape(S, nh, dh)

    # ---- attention scores + stable softmax (f32) ----
    s = jnp.einsum("qnd,knd->nqk", q3, k3, preferred_element_type=f32)   # [nh, tq, S]
    s = s + mask[None]                              # broadcast over heads / queries
    s = s - jnp.max(s, axis=-1, keepdims=True)
    p = jnp.exp(s)
    p = p * pl.reciprocal(jnp.sum(p, axis=-1, keepdims=True), approx=True)   # EUP

    # ---- context + head merge + single full-width output projection ----
    ctx = jnp.einsum("nqk,knd->qnd", p.astype(bf), v3,
                     preferred_element_type=f32)    # [tq, nh, dh]
    ctx_m = ctx.astype(bf).reshape(tq, H)           # merge heads -> [tq, H]

    attn = jnp.dot(ctx_m, wo_ref[...], preferred_element_type=f32) + bo_ref[...]
    h1 = _layernorm(xq + attn, g1_ref[...], be1_ref[...])

    # ---- feed-forward (GELU intermediate + output) + residual + LN ----
    inter = _gelu(jnp.dot(h1.astype(bf), wi_ref[...],
                          preferred_element_type=f32) + bi_ref[...])
    ff = jnp.dot(inter.astype(bf), w2_ref[...],
                 preferred_element_type=f32) + b2_ref[...]
    h2 = _layernorm(h1 + ff, g2_ref[...], be2_ref[...])
    out_ref[0] = h2.astype(out_ref.dtype)


# ------------------------------ pallas_call wrappers ------------------------------

def split_ffn_tail_pallas(qparams, ffn_q, res_q, sp, *, ts=None):
    B, S, I = ffn_q.shape
    H = res_q.shape[-1]
    if ts is None:
        ts = min(S, 256)
    assert S % ts == 0

    in_specs = [
        pl.BlockSpec(memory_space=pltpu.MemorySpace.SMEM),            # scale / zp
        pl.BlockSpec((1, ts, I), lambda b, s: (b, s, 0)),             # int8 ffn tile
        pl.BlockSpec((1, ts, H), lambda b, s: (b, s, 0)),             # int8 residual tile
        _weight_spec(sp["w"].shape, lambda b, s: (0, 0)),
        _weight_spec(sp["b"].shape, lambda b, s: (0, 0)),
        _weight_spec(sp["g"].shape, lambda b, s: (0, 0)),
        _weight_spec(sp["beta"].shape, lambda b, s: (0, 0)),
    ]
    weight_bytes = sum(int(sp[n].nbytes) for n in ("w", "b", "g", "beta"))
    act_bytes = ts * I * (1 + 8) + ts * H * (1 + 12)
    params = pltpu.CompilerParams(
        dimension_semantics=("parallel", "parallel"),
        vmem_limit_bytes=_vmem_limit_bytes(weight_bytes, act_bytes))

    return pl.pallas_call(
        split_ffn_tail_kernel,
        out_shape=jax.ShapeDtypeStruct((B, S, H), jnp.float32),
        grid=(B, S // ts),
        in_specs=in_specs,
        out_specs=pl.BlockSpec((1, ts, H), lambda b, s: (b, s, 0)),
        compiler_params=params,
    )(qparams, ffn_q, res_q, sp["w"], sp["b"], sp["g"], sp["beta"])


_PARAM_ORDER = ("wq", "bq", "wk", "bk", "wv", "bv", "wo", "bo", "g1", "be1",
                "wi", "bi", "w2", "b2", "g2", "be2")


def bert_layer_pallas(x, ext_mask, packed, num_heads, *, tq=None):
    B, S, H = x.shape
    I = packed["wi"].shape[-1]
    if tq is None:
        tq = min(S, 256)
    assert S % tq == 0
    nq = S // tq

    in_specs = [
        pl.BlockSpec((1, tq, H), lambda b, q: (b, q, 0)),   # q-tile hidden states
        pl.BlockSpec((1, S, H), lambda b, q: (b, 0, 0)),    # full-S hidden states (K/V)
        pl.BlockSpec((1, 1, S), lambda b, q: (b, 0, 0)),    # additive mask
    ]
    args = [x, x, ext_mask]
    for name in _PARAM_ORDER:
        p = packed[name]
        # grid-invariant, single-buffered weight block
        in_specs.append(_weight_spec(p.shape, lambda b, q, nd=p.ndim: (0,) * nd))
        args.append(p)

    weight_bytes = sum(int(packed[n].nbytes) for n in _PARAM_ORDER)
    act_bytes = 4 * (3 * tq * H + 3 * S * H + 2 * num_heads * tq * S + 2 * tq * I)
    params = pltpu.CompilerParams(
        dimension_semantics=("parallel", "parallel"),
        vmem_limit_bytes=_vmem_limit_bytes(weight_bytes, act_bytes))

    kernel = functools.partial(bert_layer_kernel, num_heads=num_heads)
    return pl.pallas_call(
        kernel,
        out_shape=jax.ShapeDtypeStruct((B, S, H), x.dtype),
        grid=(B, nq),
        in_specs=in_specs,
        out_specs=pl.BlockSpec((1, tq, H), lambda b, q: (b, q, 0)),
        compiler_params=params,
    )(*args)


# ------------------------------ parameter packing ---------------------------------

def pack_split_output_params(sp):
    return {
        "w": sp["w"].astype(jnp.bfloat16),   # [I, H]
        "b": sp["b"],                        # [1, H] f32
        "g": sp["g"], "beta": sp["beta"],    # LayerNorm params, f32
    }


def pack_layer_params(p, num_heads):
    """Matmul weights in bf16; plain [H,H]/[H,I]/[I,H] layouts (full-width MXU matmuls,
    no per-head blocking)."""
    del num_heads  # head split happens inside the kernel via a cheap reshape
    bf = jnp.bfloat16
    return {
        "wq": p["wq"].astype(bf), "bq": p["bq"],
        "wk": p["wk"].astype(bf), "bk": p["bk"],
        "wv": p["wv"].astype(bf), "bv": p["bv"],
        "wo": p["wo"].astype(bf), "bo": p["bo"],
        "g1": p["g1"], "be1": p["be1"],
        "wi": p["wi"].astype(bf), "bi": p["bi"],
        "w2": p["w2"].astype(bf), "b2": p["b2"],
        "g2": p["g2"], "be2": p["be2"],
    }


# ------------------------------ module-level forward -------------------------------

def midibert_back_ffn_quant_res_forward(ffn_q, ffn_scale, ffn_zp,
                                        res_q, res_scale, res_zp,
                                        attn_mask, split_params, layer_params,
                                        num_heads):
    """Forward of MidiBertBackFFNQuantRes:
       fused int8 dequant -> split-layer FFN tail -> remaining encoder layers."""
    B, S, _ = ffn_q.shape
    H = res_q.shape[-1]
    assert H % num_heads == 0

    qparams = jnp.array([ffn_scale, ffn_zp, res_scale, res_zp], jnp.float32)
    seq = split_ffn_tail_pallas(qparams, ffn_q, res_q,
                                pack_split_output_params(split_params))

    if attn_mask is not None:
        ext = (1.0 - attn_mask.astype(jnp.float32))[:, None, :] * -10000.0  # [B,1,S]
    else:
        ext = jnp.zeros((B, 1, S), jnp.float32)

    # TODO(synk): rpc.RRef parameter plumbing and .to('cuda:0')/.cpu() device moves have
    # no Pallas equivalent (placement handled by JAX).
    # TODO(synk): hide per-layer weight DMA via cross-call weight prefetch or by fusing
    # 2 layers per pallas_call; and optionally carry inter-layer hidden states in bf16.
    for p in layer_params:
        seq = bert_layer_pallas(seq, ext, pack_layer_params(p, num_heads), num_heads)
    return seq  # last_hidden_state


# ------------------------------ pure-JAX reference ---------------------------------

def _ref_layer(x, mask, p, num_heads):
    B, S, H = x.shape
    nh = num_heads
    dh = H // nh
    scale = 1.0 / math.sqrt(dh)
    bf, f32 = jnp.bfloat16, jnp.float32
    x_bf = x.astype(bf)

    def lin(a_bf, w, b):
        return jnp.dot(a_bf, w.astype(bf), preferred_element_type=f32) + b

    q = (lin(x_bf, p["wq"], p["bq"]) * scale).astype(bf)
    k = lin(x_bf, p["wk"], p["bk"]).astype(bf)
    v = lin(x_bf, p["wv"], p["bv"]).astype(bf)
    q = q.reshape(B, S, nh, dh).transpose(0, 2, 1, 3)
    k = k.reshape(B, S, nh, dh).transpose(0, 2, 1, 3)
    v = v.reshape(B, S, nh, dh).transpose(0, 2, 1, 3)

    s = jnp.einsum("bhqd,bhkd->bhqk", q, k, preferred_element_type=f32)
    s = s + mask[:, None, :, :]
    a = jax.nn.softmax(s, axis=-1)
    ctx = jnp.einsum("bhqk,bhkd->bhqd", a.astype(bf), v, preferred_element_type=f32)
    ctx = ctx.transpose(0, 2, 1, 3).reshape(B, S, H)

    attn = lin(ctx.astype(bf), p["wo"], p["bo"])
    h1 = _layernorm(x + attn, p["g1"], p["be1"])
    inter = _gelu(lin(h1.astype(bf), p["wi"], p["bi"]))
    ff = lin(inter.astype(bf), p["w2"], p["b2"])
    return _layernorm(h1 + ff, p["g2"], p["be2"])


def _ref_forward(ffn_q, ffn_scale, ffn_zp, res_q, res_scale, res_zp,
                 attn_mask, split_params, layer_params, num_heads):
    bf, f32 = jnp.bfloat16, jnp.float32
    ffn = (ffn_q.astype(f32) - ffn_zp) * ffn_scale
    res = (res_q.astype(f32) - res_zp) * res_scale
    act = _gelu(ffn)
    y = jnp.dot(act.astype(bf), split_params["w"].astype(bf),
                preferred_element_type=f32) + split_params["b"]
    seq = _layernorm(y + res, split_params["g"], split_params["beta"])

    B, S, _ = seq.shape
    ext = (1.0 - attn_mask.astype(f32))[:, None, :] * -10000.0
    for p in layer_params:
        seq = _ref_layer(seq, ext, p, num_heads)
    return seq


# ------------------------------ init helpers ---------------------------------------

def init_layer_params(key, H, I):
    ks = jax.random.split(key, 12)
    std = 0.02
    n = lambda k, shape: jax.random.normal(k, shape, jnp.float32) * std
    return {
        "wq": n(ks[0], (H, H)), "bq": n(ks[1], (1, H)),
        "wk": n(ks[2], (H, H)), "bk": n(ks[3], (1, H)),
        "wv": n(ks[4], (H, H)), "bv": n(ks[5], (1, H)),
        "wo": n(ks[6], (H, H)), "bo": n(ks[7], (1, H)),
        "g1": jnp.ones((1, H), jnp.float32), "be1": jnp.zeros((1, H), jnp.float32),
        "wi": n(ks[8], (H, I)), "bi": n(ks[9], (1, I)),
        "w2": n(ks[10], (I, H)), "b2": n(ks[11], (1, H)),
        "g2": jnp.ones((1, H), jnp.float32), "be2": jnp.zeros((1, H), jnp.float32),
    }


def init_split_output_params(key, H, I):
    k1, k2 = jax.random.split(key)
    std = 0.02
    return {
        "w": jax.random.normal(k1, (I, H), jnp.float32) * std,
        "b": jax.random.normal(k2, (1, H), jnp.float32) * std,
        "g": jnp.ones((1, H), jnp.float32),
        "beta": jnp.zeros((1, H), jnp.float32),
    }


# ---------------------------------- main --------------------------------------------

if __name__ == "__main__":
    B, S, H = 2, 8, 32
    NUM_HEADS = 4
    INTERMEDIATE = 128
    TOTAL_LAYERS, SPLIT_LAYER = 4, 1     # back half = split-layer FFN tail + layers 2..3

    root = jax.random.PRNGKey(0)
    k_ffn, k_res, k_split, k_layers = jax.random.split(root, 4)

    # simulated per-tensor-affine qint8 tensors (what torch.dequantize would consume):
    #   quantized_ffn = intermediate FFN pre-activation of the split layer [B, S, I]
    #   quantized_residual = input to that FFN block (attention output)    [B, S, H]
    ffn_f = jax.random.normal(k_ffn, (B, S, INTERMEDIATE), jnp.float32) * 1.5
    res_f = jax.random.normal(k_res, (B, S, H), jnp.float32)
    FFN_SCALE, FFN_ZP = 0.05, 3
    RES_SCALE, RES_ZP = 0.02, -5
    ffn_q = jnp.clip(jnp.round(ffn_f / FFN_SCALE) + FFN_ZP, -128, 127).astype(jnp.int8)
    res_q = jnp.clip(jnp.round(res_f / RES_SCALE) + RES_ZP, -128, 127).astype(jnp.int8)

    # attention mask: batch 0 fully valid, batch 1 has last 2 positions padded
    attn_mask = jnp.ones((B, S), jnp.float32).at[1, -2:].set(0.0)

    split_params = init_split_output_params(k_split, H, INTERMEDIATE)
    n_back = TOTAL_LAYERS - (SPLIT_LAYER + 1)
    layer_keys = jax.random.split(k_layers, n_back)
    layer_params = [init_layer_params(k, H, INTERMEDIATE) for k in layer_keys]

    out = midibert_back_ffn_quant_res_forward(
        ffn_q, FFN_SCALE, FFN_ZP, res_q, RES_SCALE, RES_ZP,
        attn_mask, split_params, layer_params, NUM_HEADS)
    out = jax.block_until_ready(out)

    ref = _ref_forward(ffn_q, FFN_SCALE, FFN_ZP, res_q, RES_SCALE, RES_ZP,
                       attn_mask, split_params, layer_params, NUM_HEADS)

    assert out.shape == (B, S, H) and out.dtype == jnp.float32
    max_err = float(jnp.max(jnp.abs(out - ref)))
    assert jnp.allclose(out, ref, atol=2e-3, rtol=2e-3), \
        f"mismatch vs pure-JAX reference (max abs err {max_err})"
    print("KERNEL_OK")
</pallas_src>

<mosaic_0001>
module attributes {stable_mosaic.version = 11 : i64} {
  func.func @split_ffn_tail_kernel(%arg0: i32, %arg1: i32, %arg2: memref<4xf32, #tpu.memory_space<smem>>, %arg3: memref<1x8x128xi8, #tpu.memory_space<vmem>>, %arg4: memref<1x8x32xi8, #tpu.memory_space<vmem>>, %arg5: memref<128x32xbf16, #tpu.memory_space<vmem>>, %arg6: memref<1x32xf32, #tpu.memory_space<vmem>>, %arg7: memref<1x32xf32, #tpu.memory_space<vmem>>, %arg8: memref<1x32xf32, #tpu.memory_space<vmem>>, %arg9: memref<1x8x32xf32, #tpu.memory_space<vmem>>) attributes {dimension_semantics = [#tpu.dimension_semantics<parallel>, #tpu.dimension_semantics<parallel>], iteration_bounds = array<i64: 2, 1>, scalar_prefetch = 0 : i64, scratch_operands = 0 : i64, tpu.core_type = #tpu.core_type<tc>, window_params = [{transform_indices = @transform_0, window_bounds = array<i64: 4>}, {transform_indices = @transform_1, window_bounds = array<i64: 1, 8, 128>}, {transform_indices = @transform_2, window_bounds = array<i64: 1, 8, 32>}, {pipeline_mode = #tpu.pipeline_mode<synchronous>, transform_indices = @transform_3, window_bounds = array<i64: 128, 32>}, {pipeline_mode = #tpu.pipeline_mode<synchronous>, transform_indices = @transform_4, window_bounds = array<i64: 1, 32>}, {pipeline_mode = #tpu.pipeline_mode<synchronous>, transform_indices = @transform_5, window_bounds = array<i64: 1, 32>}, {pipeline_mode = #tpu.pipeline_mode<synchronous>, transform_indices = @transform_6, window_bounds = array<i64: 1, 32>}, {transform_indices = @transform_7, window_bounds = array<i64: 1, 8, 32>}]} {
    %c0 = arith.constant 0 : index
    %0 = memref.load %arg2[%c0] : memref<4xf32, #tpu.memory_space<smem>>
    %c1 = arith.constant 1 : index
    %1 = memref.load %arg2[%c1] : memref<4xf32, #tpu.memory_space<smem>>
    %c2 = arith.constant 2 : index
    %2 = memref.load %arg2[%c2] : memref<4xf32, #tpu.memory_space<smem>>
    %c3 = arith.constant 3 : index
    %3 = memref.load %arg2[%c3] : memref<4xf32, #tpu.memory_space<smem>>
    %c0_0 = arith.constant 0 : index
    %c0_1 = arith.constant 0 : index
    %c0_2 = arith.constant 0 : index
    %4 = vector.load %arg3[%c0_0, %c0_1, %c0_2] : memref<1x8x128xi8, #tpu.memory_space<vmem>>, vector<1x8x128xi8>
    %5 = vector.shape_cast %4 : vector<1x8x128xi8> to vector<8x128xi8>
    %6 = arith.sitofp %5 : vector<8x128xi8> to vector<8x128xf32>
    %7 = vector.broadcast %1 : f32 to vector<8x128xf32>
    %8 = arith.subf %6, %7 : vector<8x128xf32>
    %9 = vector.broadcast %0 : f32 to vector<8x128xf32>
    %10 = arith.mulf %8, %9 : vector<8x128xf32>
    %c0_3 = arith.constant 0 : index
    %c0_4 = arith.constant 0 : index
    %c0_5 = arith.constant 0 : index
    %11 = vector.load %arg4[%c0_3, %c0_4, %c0_5] : memref<1x8x32xi8, #tpu.memory_space<vmem>>, vector<1x8x32xi8>
    %12 = vector.shape_cast %11 : vector<1x8x32xi8> to vector<8x32xi8>
    %13 = arith.sitofp %12 : vector<8x32xi8> to vector<8x32xf32>
    %14 = vector.broadcast %3 : f32 to vector<8x32xf32>
    %15 = arith.subf %13, %14 : vector<8x32xf32>
    %16 = vector.broadcast %2 : f32 to vector<8x32xf32>
    %17 = arith.mulf %15, %16 : vector<8x32xf32>
    %cst = arith.constant 5.000000e-01 : f32
    %18 = vector.broadcast %cst : f32 to vector<8x128xf32>
    %19 = arith.mulf %18, %10 : vector<8x128xf32>
    %cst_6 = arith.constant 0.707106769 : f32
    %20 = vector.broadcast %cst_6 : f32 to vector<8x128xf32>
    %21 = arith.mulf %10, %20 : vector<8x128xf32>
    %22 = math.erf %21 : vector<8x128xf32>
    %cst_7 = arith.constant 1.000000e+00 : f32
    %23 = vector.broadcast %cst_7 : f32 to vector<8x128xf32>
    %24 = arith.addf %23, %22 : vector<8x128xf32>
    %25 = arith.mulf %19, %24 : vector<8x128xf32>
    %26 = arith.truncf %25 : vector<8x128xf32> to vector<8x128xbf16>
    %c0_8 = arith.constant 0 : index
    %c0_9 = arith.constant 0 : index
    %27 = vector.load %arg5[%c0_8, %c0_9] : memref<128x32xbf16, #tpu.memory_space<vmem>>, vector<128x32xbf16>
    %cst_10 = arith.constant dense<0.000000e+00> : vector<8x32xf32>
    %28 = tpu.matmul %26, %27, %cst_10 {dimension_numbers = #tpu.dot_dimension_numbers<[1], [0], [0], [1], [0, 0, 1, 1], [], []>} : vector<8x128xbf16>, vector<128x32xbf16>, vector<8x32xf32> -> vector<8x32xf32>
    %c0_11 = arith.constant 0 : index
    %c0_12 = arith.constant 0 : index
    %29 = vector.load %arg6[%c0_11, %c0_12] : memref<1x32xf32, #tpu.memory_space<vmem>>, vector<1x32xf32>
    %30 = vector.broadcast %29 : vector<1x32xf32> to vector<8x32xf32>
    %31 = arith.addf %28, %30 : vector<8x32xf32>
    %32 = arith.addf %31, %17 : vector<8x32xf32>
    %c0_13 = arith.constant 0 : index
    %c0_14 = arith.constant 0 : index
    %33 = vector.load %arg7[%c0_13, %c0_14] : memref<1x32xf32, #tpu.memory_space<vmem>>, vector<1x32xf32>
    %c0_15 = arith.constant 0 : index
    %c0_16 = arith.constant 0 : index
    %34 = vector.load %arg8[%c0_15, %c0_16] : memref<1x32xf32, #tpu.memory_space<vmem>>, vector<1x32xf32>
    %cst_17 = arith.constant dense<0.000000e+00> : vector<8xf32>
    %35 = vector.multi_reduction <add>, %32, %cst_17 [1] : vector<8x32xf32> to vector<8xf32>
    %36 = vector.shape_cast %35 : vector<8xf32> to vector<8x1xf32>
    %cst_18 = arith.constant 3.200000e+01 : f32
    %37 = vector.broadcast %cst_18 : f32 to vector<8x1xf32>
    %38 = arith.divf %36, %37 : vector<8x1xf32>
    %39 = vector.broadcast %38 : vector<8x1xf32> to vector<8x32xf32>
    %40 = arith.subf %32, %39 : vector<8x32xf32>
    %41 = arith.mulf %40, %40 : vector<8x32xf32>
    %cst_19 = arith.constant dense<0.000000e+00> : vector<8xf32>
    %42 = vector.multi_reduction <add>, %41, %cst_19 [1] : vector<8x32xf32> to vector<8xf32>
    %43 = vector.shape_cast %42 : vector<8xf32> to vector<8x1xf32>
    %cst_20 = arith.constant 3.200000e+01 : f32
    %44 = vector.broadcast %cst_20 : f32 to vector<8x1xf32>
    %45 = arith.divf %43, %44 : vector<8x1xf32>
    %46 = vector.broadcast %38 : vector<8x1xf32> to vector<8x32xf32>
    %47 = arith.subf %32, %46 : vector<8x32xf32>
    %cst_21 = arith.constant 9.99999996E-13 : f32
    %48 = vector.broadcast %cst_21 : f32 to vector<8x1xf32>
    %49 = arith.addf %45, %48 : vector<8x1xf32>
    %50 = math.rsqrt %49 : vector<8x1xf32>
    %51 = vector.broadcast %50 : vector<8x1xf32> to vector<8x32xf32>
    %52 = arith.mulf %47, %51 : vector<8x32xf32>
    %53 = vector.broadcast %33 : vector<1x32xf32> to vector<8x32xf32>
    %54 = arith.mulf %52, %53 : vector<8x32xf32>
    %55 = vector.broadcast %34 : vector<1x32xf32> to vector<8x32xf32>
    %56 = arith.addf %54, %55 : vector<8x32xf32>
    %c0_22 = arith.constant 0 : index
    %c0_23 = arith.constant 0 : index
    %c0_24 = arith.constant 0 : index
    %57 = vector.load %arg9[%c0_22, %c0_23, %c0_24] : memref<1x8x32xf32, #tpu.memory_space<vmem>>, vector<1x8x32xf32>
    %58 = vector.shape_cast %57 : vector<1x8x32xf32> to vector<8x32xf32>
    %59 = vector.shape_cast %56 : vector<8x32xf32> to vector<1x8x32xf32>
    tpu.vector_store %arg9[%c0_22, %c0_23, %c0_24], %59 {strides = array<i32>} : memref<1x8x32xf32, #tpu.memory_space<vmem>>, vector<1x8x32xf32>,
    return
  }
  func.func @transform_0(%arg0: i32, %arg1: i32) -> i32 {
    %c0_i32 = arith.constant 0 : i32
    %c0_i32_0 = arith.constant 0 : i32
    return %c0_i32 : i32
  }
  func.func @transform_1(%arg0: i32, %arg1: i32) -> (i32, i32, i32) {
    %c0_i32 = arith.constant 0 : i32
    %c0_i32_0 = arith.constant 0 : i32
    return %arg0, %arg1, %c0_i32 : i32, i32, i32
  }
  func.func @transform_2(%arg0: i32, %arg1: i32) -> (i32, i32, i32) {
    %c0_i32 = arith.constant 0 : i32
    %c0_i32_0 = arith.constant 0 : i32
    return %arg0, %arg1, %c0_i32 : i32, i32, i32
  }
  func.func @transform_3(%arg0: i32, %arg1: i32) -> (i32, i32) {
    %c0_i32 = arith.constant 0 : i32
    %c0_i32_0 = arith.constant 0 : i32
    %c0_i32_1 = arith.constant 0 : i32
    return %c0_i32, %c0_i32_0 : i32, i32
  }
  func.func @transform_4(%arg0: i32, %arg1: i32) -> (i32, i32) {
    %c0_i32 = arith.constant 0 : i32
    %c0_i32_0 = arith.constant 0 : i32
    %c0_i32_1 = arith.constant 0 : i32
    return %c0_i32, %c0_i32_0 : i32, i32
  }
  func.func @transform_5(%arg0: i32, %arg1: i32) -> (i32, i32) {
    %c0_i32 = arith.constant 0 : i32
    %c0_i32_0 = arith.constant 0 : i32
    %c0_i32_1 = arith.constant 0 : i32
    return %c0_i32, %c0_i32_0 : i32, i32
  }
  func.func @transform_6(%arg0: i32, %arg1: i32) -> (i32, i32) {
    %c0_i32 = arith.constant 0 : i32
    %c0_i32_0 = arith.constant 0 : i32
    %c0_i32_1 = arith.constant 0 : i32
    return %c0_i32, %c0_i32_0 : i32, i32
  }
  func.func @transform_7(%arg0: i32, %arg1: i32) -> (i32, i32, i32) {
    %c0_i32 = arith.constant 0 : i32
    %c0_i32_0 = arith.constant 0 : i32
    return %arg0, %arg1, %c0_i32 : i32, i32, i32
  }
}

</mosaic_0001>

<bundles_post_ra>
// kernel: tpu_custom_call.1
= control target key start
LH: loop header
LB: loop body
LE: loop exit
PB: predicated region body
PF: predicated region fallthrough
CT: control target
= control target key end

     0   :  { %12 = vsyncpa [#allocation4], 0  ;;  %s1082_s0 = inlined_call_operand.vmem [shape: f32[4], index: 0, kind: input, shape index: {}]   ;;  %s1083_s1 = inlined_call_operand.vmem [shape: s8[2,8,128], index: 1, kind: input, shape index: {}]   ;;  %s1084_s2 = inlined_call_operand.vmem [shape: s8[2,8,32], index: 2, kind: input, shape index: {}]   ;;  %s1085_s3 = inlined_call_operand.vmem [shape: bf16[128,32], index: 3, kind: input, shape index: {}]   ;;  %s1086_s4 = inlined_call_operand.vmem [shape: f32[1,32], index: 4, kind: input, shape index: {}]   ;;  %s1087_s5 = inlined_call_operand.vmem [shape: f32[1,32], index: 5, kind: input, shape index: {}]   ;;  %s1088_s6 = inlined_call_operand.vmem [shape: f32[1,32], index: 6, kind: input, shape index: {}]   ;;  %s1089_s7 = inlined_call_operand.hbm [shape: f32[2,8,32], index: 7, kind: output, shape index: {}]  }
   0x1   :  { %13 = vsyncpa [#allocation3], 0 }
   0x2   :  { %15 = vsyncpa [#allocation3 + $0x1], 0  ;;  %s903_s24 = smov 0   ;;  %s905_s25 = smov 0  }
   0x3   :  { %s907_s26 = smov 0   ;;  %s909_s27 = smov 0  }
   0x4   :  { %s911_s28 = smov 0   ;;  %s913_s29 = smov 0  }
   0x5 LB: > { %s623_s30 = sadd.s32 4294967295, %s857_s29   ;;  %s624_s8 = sadd.s32 4294967294, %s857_s29   ;;  %s857_s29 = sphi %s913_s29, %s21_s29   ;;  %s853_s28 = sphi %s911_s28, %s1098_s28   ;;  %s849_s27 = sphi %s909_s27, %s1097_s27   ;;  %s845_s26 = sphi %s907_s26, %s1096_s26   ;;  %s841_s25 = sphi %s905_s25, %s1095_s25   ;;  %s837_s24 = sphi %s903_s24, %s1094_s24  }
   0x6   : > { %s33_s9 = sadd.s32 1, %s853_s28  ;;  %s203_s10 = sadd.s32 1, %s845_s26 }
   0x7   : > { %p35_p0 = scmp.ge.s32.totalorder %s33_s9, 2  ;;  %p213_p1 = scmp.ne.s32.totalorder %s845_s26, %s841_s25 }
   0x8   : > { %p214_p2 = scmp.eq.s32.totalorder %s623_s30, 1  ;;  %p219_p3 = scmp.ne.s32.totalorder %s841_s25, %s837_s24 }
   0x9   : > { %s1100_s9 = smov (%p35_p0, %s33_s9), 0  ;;  %p220_p5 = scmp.eq.s32.totalorder %s624_s8, 1 }
   0xa   : > { %p943_p4 = por %p214_p2, %p213_p1  ;;  %s198_s12 = ssub.s32 %s853_s28, %s1100_s9 }
   0xb   : > { %p625_p6 = scmp.ge.s32.totalorder %s857_s29, 1  ;;  %p201_p7 = scmp.eq.s32.totalorder %s198_s12, 0 }
   0xc   : > { %p950_p8 = por %p220_p5, %p219_p3  ;;  %p227_p9 = scmp.lt.s32.totalorder %s857_s29, 3 }
   0xd   : > { %s956_s14 = scalar_select %p201_p7, %s845_s26, %s203_s10  }
   0xe   : > { %p958_p10 = pnand %p625_p6, %p227_p9  ;;  %p962_p11 = scmp.eq.s32.totalorder %s623_s30, 0 }
   0xf   : > { %s240_s19 = sshll.u32 %s1082_s0, 4  ;;  %s241_s19 = int_to_ptr.vmem [resolvable:$true] %s240_s19 }
  0x10   : > { %p686_p12 = pneg %p958_p10  ;;  %s760_s20 = scalar_lea.vmem %s241_s19, 16 }
  0x11   : > { %p761_p0 = scmp.ne.s32.totalorder %s241_s19, %s760_s20  ;;  %p768_p5 = scmp.lt.s32.totalorder %s241_s19, %s241_s19 }
  0x12   : > { %p687_p13 = pnand %p962_p11, %p686_p12  ;;  %p769_p6 = scmp.lt.s32.totalorder %s760_s20, %s760_s20 }
  0x14   : > { %p762_p1 = pneg %p687_p13  ;;  %p770_p7 = por %p769_p6, %p768_p5 }
  0x16   : > { %p763_p2 = pnand %p762_p1, %p761_p0 }
  0x18   : > { %p764_p3 = pneg %p763_p2 }
  0x1a   : > { %p771_p9 = pnand %p770_p7, %p764_p3 }
  0x1c   : > { %774 = shalt.err (!%p771_p9)
}
  0x1d   : > { %s859_s21 = smov [#allocation2]   ;;  %285 = sbr.rel (%p958_p10) target bundleno = 616 (0x268), region = 48 }
  0x1e   : > { %689 = dma.vmem_to_smem (!%p687_p13), %s241_s19, 16, %s859_s21, [#allocation4]  }
  0x24   : > { %828 = dma.done.wait (%p962_p11), [#allocation4], 16  }
  0x25   : > { %830 = vsyncadd (%p962_p11), [#allocation4], 4294967280 }
  0x26   : > { %291 = sfence }
  0x27   : > { %v748_v0 = vld [vmem:[%s1085_s3] sm:$0xff]   ;;  %v860_v1 = vmov 0.0   ;;  %v749_v2 = vld [vmem:[%s1085_s3 + $0x8] sm:$0xff]   ;;  %vm861_vm0 = vmmov 0   ;;  %p327_p10 = scmp.lt.s32.totalorder %s849_s27, 1  ;;  %v750_v3 = vld [vmem:[%s1085_s3 + $0x10] sm:$0xff]  }
  0x28   : > { %660 = vmatprep.subr.bf16.mxu0 %v860_v1  ;;  %676 = vmatprep.mubr.msk.bf16.mxu0 %vm861_vm0, %v860_v1  ;;  %s342_s20 = sld [smem:[#allocation2]]  ;;  %s633_s21 = sld [smem:[#allocation2 + $0x1]]  ;;  %v751_v6 = vld [vmem:[%s1085_s3 + $0x18] sm:$0xff]   ;;  %v752_v8 = vld [vmem:[%s1085_s3 + $0x20] sm:$0xff]   ;;  %v753_v13 = vld [vmem:[%s1085_s3 + $0x28] sm:$0xff]   ;;  %vm480_vm1 = vcmask 261120  }
  0x29   : > { %661 = vmatpush3.bf16.msra.mxu0 %v748_v0  ;;  %s987_s10 = scalar_select %p327_p10, %s849_s27, 1  ;;  %v754_v15 = vld [vmem:[%s1085_s3 + $0x30] sm:$0xff]   ;;  %v755_v16 = vld [vmem:[%s1085_s3 + $0x38] sm:$0xff]   ;;  %v636_v28 = vld [vmem:[%s1086_s4] ss:$0 sm:$0xff] }
  0x2a   : > { %662 = vmatprep.subr.bf16.mxu0 %v860_v1  ;;  %s635_s30 = sld [smem:[#allocation2 + $0x3]]  ;;  %s634_s8 = sld [smem:[#allocation2 + $0x2]]  ;;  %v645_v46 = vld [vmem:[%s1087_s5] ss:$0 sm:$0xff] }
  0x2b   : > { %s631_s16 = sshll.u32 %s987_s10, 1  ;;  %s324_s10 = sand.u32 1, %s841_s25   ;;  %v646_v48 = vld [vmem:[%s1088_s6] ss:$0 sm:$0xff] }
  0x2c   : > { %s333_s19 = scalar_lea.vmem %s1083_s1, %s631_s16  ;;  %s340_s23 = scalar_lea.vmem %s1084_s2, %s631_s16 }
  0x2d   : > { %663 = vmatpush3.bf16.msra.mxu0 %v749_v2  ;;  %v346_v4 = vld [vmem:[%s333_s19] sm:$0x3]  ;;  %s630_s16 = sshll.u32 %s324_s10, 3  ;;  %s511_s15 = scalar_lea.sflag [#allocation3], %s324_s10 }
  0x2e   : > { %664 = vmatprep.subr.bf16.mxu0 %v860_v1  ;;  %v347_v5 = vunpack.c.0.s8 %v346_v4  ;;  %v349_v9 = vstv %s633_s21  ;;  %v351_v10 = vstv %s342_s20  ;;  %v353_v22 = vld [vmem:[%s340_s23] sm:$0x3]  ;;  %s648_s21 = sshll.u32 %s849_s27, 7  ;;  %s326_s22 = scalar_lea.vmem [#allocation5], %s630_s16 }
  0x2f   : > { %v354_v23 = vunpack.c.0.s8 %v353_v22  ;;  %s525_s23 = sshll.u32 %s326_s22, 4  ;;  %s1034_s12 = scalar_lea.hbm %s1089_s7, %s648_s21  ;;  %s1036_s23 = int_to_ptr.vmem [resolvable:$true] %s525_s23 }
  0x30   : > { %v348_v7 = vcvt.s32.f32 %v347_v5  ;;  %v356_v25 = vstv %s635_s30  ;;  %v358_v27 = vstv %s634_s8  ;;  %s775_s17 = scalar_lea.vmem %s1036_s23, 128  ;;  %s862_s27 = smov [#allocation5]  }
  0x31   : > { %665 = vmatpush3.bf16.msra.mxu0 %v750_v3  ;;  %v355_v24 = vcvt.s32.f32 %v354_v23  ;;  %p776_p11 = scmp.ne.s32.totalorder %s1036_s23, %s775_s17  ;;  %s779_s16 = sshll.u32 %s862_s27, 4  ;;  %s780_s16 = int_to_ptr.vmem [resolvable:$false] %s779_s16 }
  0x32   : > { %666 = vmatprep.subr.bf16.mxu0 %v860_v1  ;;  %v350_v11 = vsub.f32 %v348_v7, %v349_v9  ;;  %s781_s18 = scalar_lea.vmem %s780_s16, 256  ;;  %p782_p0 = scmp.lt.s32.totalorder %s1036_s23, %s780_s16 }
  0x33   : > { %v357_v26 = vsub.f32 %v355_v24, %v356_v25  ;;  %p777_p12 = pnand %p776_p11, %p943_p4  ;;  %p783_p1 = scmp.lt.s32.totalorder %s781_s18, %s775_s17 }
  0x34   : > { %v352_v12 = vmul.f32 %v351_v10, %v350_v11 }
  0x35   : > { %667 = vmatpush3.bf16.msra.mxu0 %v751_v6  ;;  %v359_v29 = vmul.f32 %v358_v27, %v357_v26  ;;  %p778_p13 = pneg %p777_p12  ;;  %p784_p2 = por %p783_p1, %p782_p0 }
  0x36   : > { %668 = vmatprep.subr.bf16.mxu0 %v860_v1  ;;  %v361_v14 = vmul.f32 0.70710677, %v352_v12  ;;  %v360_v17 = vmul.f32 0.5, %v352_v12 }
  0x37   : > { %p785_p3 = pnand %p784_p2, %p778_p13 }
  0x38   : > { %756 = verf.f32 %v361_v14 }
  0x39   : > { %669 = vmatpush3.bf16.msra.mxu0 %v752_v8 }
  0x3a   : > { %670 = vmatprep.subr.bf16.mxu0 %v860_v1 }
  0x3d   : > { %671 = vmatpush3.bf16.msra.mxu0 %v753_v13 }
  0x3e   : > { %672 = vmatprep.subr.bf16.mxu0 %v860_v1 }
  0x41   : > { %673 = vmatpush3.bf16.msra.mxu0 %v754_v15 }
  0x42   : > { %674 = vmatprep.subr.bf16.mxu0 %v860_v1  ;;  %v757_v18 = vpop.eup %756 }
  0x43   : > { %v363_v19 = vadd.f32 1.0, %v757_v18 }
  0x45   : > { %675 = vmatpush3.bf16.msra.mxu0 %v755_v16  ;;  %v364_v20 = vmul.f32 %v363_v19, %v360_v17 }
  0x47   : > { %v365_v21 = vpack.c.bf16 %v364_v20, %v364_v20 }
  0x49   : > { %677 = vmatmul.mubr.bf16.vlgmr.msra.gmra.mrb[0].mxu0 %v365_v21 }
 0x11c   : > { %v471_v30 = vpop.f32.mrb[0].mxu0 }
 0x11d   : > { %v472_v31 = vadd.f32 %v636_v28, %v471_v30  ;;  %v678_v32 = vpop.f32.mrb[1].mxu0 }
 0x11e   : > { %v474_v33 = vpop.f32.mrb[2].mxu0 }
 0x11f   : > { %v679_v34 = vpop.f32.mrb[3].mxu0  ;;  %v477_v35 = vadd.f32 %v472_v31, %v359_v29 }
 0x121   : > { %v481_v36 = vsel %vm480_vm1, %v477_v35, 0.0 }
 0x122   : > { %482 = vadd.xlane.f32.xlu0 %v481_v36 }
 0x1af   : > { %v483_v37 = vpop.xlane.xlu0 %482 }
 0x1b0   : > { %v485_v38 = vmul.f32 0.03125, %v483_v37 }
 0x1b2   : > { %v486_v39 = vsub.f32 %v477_v35, %v485_v38 }
 0x1b4   : > { %v487_v40 = vmul.f32 %v486_v39, %v486_v39 }
 0x1b6   : > { %v488_v41 = vsel %vm480_vm1, %v487_v40, 0.0 }
 0x1b7   : > { %489 = vadd.xlane.f32.xlu0 %v488_v41 }
 0x244   : > { %v490_v42 = vpop.xlane.xlu0 %489 }
 0x245   : > { %v491_v43 = vmul.f32 0.03125, %v490_v42 }
 0x247   : > { %v492_v44 = vadd.f32 1e-12, %v491_v43 }
 0x249   : > { %758 = vrsqrt.f32 %v492_v44 }
 0x253   : > { %v759_v45 = vpop.eup %758 }
 0x254   : > { %v494_v47 = vmul.f32 %v759_v45, %v486_v39 }
 0x256   : > { %v501_v49 = vmul.f32 %v645_v46, %v494_v47 }
 0x258   : > { %v508_v50 = vadd.f32 %v646_v48, %v501_v49 }
 0x25a   : > { %509 = vst.msk [vmem:[%s326_s22] sm:$0xff] %vm480_vm1, %v508_v50 }
 0x25b   : > { %788 = shalt.err (!%p785_p3)
}
 0x25c   : > { %s789_s10 = scalar_lea.hbm %s1034_s12, 128  ;;  %s793_s21 = scalar_lea.hbm %s1089_s7, 256 }
 0x25d   : > { %p790_p5 = scmp.ne.s32.totalorder %s1034_s12, %s789_s10  ;;  %p794_p9 = scmp.lt.u32.totalorder %s1034_s12, %s1089_s7 }
 0x25e   : > { %p795_p10 = scmp.lt.u32.totalorder %s793_s21, %s789_s10  ;;  %p797_p12 = scmp.lt.u32.totalorder %s789_s10, %s1034_s12 }
 0x25f   : > { %p791_p6 = pnand %p790_p5, %p943_p4 }
 0x260   : > { %p796_p11 = por %p795_p10, %p794_p9 }
 0x261   : > { %p792_p7 = pneg %p791_p6 }
 0x262   : > { %p798_p13 = por %p797_p12, %p796_p11 }
 0x264   : > { %p799_p0 = pnand %p798_p13, %p792_p7 }
 0x266   : > { %802 = shalt.err (!%p799_p0)
}
 0x267   : > { %684 = dma.vmem_to_hbm [thread:$0]  (%p943_p4), %s1036_s23, 128, %s1034_s12, %s511_s15  }
 0x268 PF: > { %p696_p1 = scmp.ge.s32.totalorder %s857_s29, 2  ;;  %s537_s8 = sand.u32 1, %s837_s24  }
 0x269   : > { %s538_s17 = scalar_lea.sflag [#allocation3], %s537_s8 }
 0x26a   : > { %p691_p2 = pnand %p696_p1, %p950_p8 }
 0x26c   : > { %832 = dma.done.wait (!%p691_p2), %s538_s17, 128  }
 0x26d   : > { %834 = vsyncadd (!%p691_p2), %s538_s17, 4294967168  ;;  %s21_s29 = sadd.s32 1, %s857_s29   ;;  %s1094_s24 = smov %s841_s25 }
 0x26e   : > { %p18_p3 = scmp.ge.s32.totalorder %s21_s29, 4   ;;  %s1095_s25 = smov %s845_s26 }
 0x26f   : > { %s1096_s26 = smov %s956_s14  ;;  %s1097_s27 = smov %s853_s28 }
 0x270   : > { %s1098_s28 = smov %s1100_s9  ;;  %20 = sbr.rel (!%p18_p3) target bundleno = 5 (0x5), region = 91 }
 0x277   :  { %543 = vsyncpa [#allocation3], 1 }
 0x278   :  { %545 = vsyncpa [#allocation3 + $0x1], 1 }
 0x279   :  { %546 = vsyncpa [#allocation4], 1 }
 0x27a   :  { %548 = vsyncpa [#allocation4 + $0x1], 1 }

</bundles_post_ra>
